<compile_context>
chip_gen: v7x
topology: tpu7x:2x2x1
jax: 0.10.0
libtpu: 0.0.40
codegen_flags: <defaults>
</compile_context>

<pallas_src>
import math

import jax
import jax.numpy as jnp
from jax.experimental import pallas as pl
from jax.experimental.pallas import tpu as pltpu

_LANE = 128


def _seq_embed_kernel(type_ref, params_ref, emb_ref, w_ref, pe_ref, o_ref):
    # type_ref:   (TILE_S, 1)  int32   entity types for this tile
    # params_ref: (TILE_S, P)  f32     entity params for this tile
    # emb_ref:    (NT, Dp)     f32     entity-type embedding table (resident)
    # w_ref:      (P, Dp)      f32     param_fc weight, pre-transposed (resident)
    # pe_ref:     (TILE_S, Dp) f32     pos-embed rows (+ folded bias) for this tile
    # o_ref:      (TILE_S, Dp)
    nt = emb_ref.shape[0]
    tile_s = type_ref.shape[0]

    # safe_entity_type: negatives -> nt-1, then clamp to [0, nt-1].
    t = type_ref[...]
    t = jnp.where(t < 0, nt - 1, t)
    t = jnp.clip(t, 0, nt - 1)

    # Embedding lookup as one-hot @ table (NT is tiny; single MXU pass, no
    # data-dependent gather).
    onehot = (jax.lax.broadcasted_iota(jnp.int32, (tile_s, nt), 1) == t)
    type_embed = jnp.dot(onehot.astype(jnp.float32), emb_ref[...],
                         preferred_element_type=jnp.float32)

    # safe_params (negatives -> 0) then Linear (bias folded into pe_ref).
    p = jnp.maximum(params_ref[...].astype(jnp.float32), 0.0)
    param_embed = jnp.dot(p, w_ref[...], preferred_element_type=jnp.float32)

    out = type_embed + param_embed + pe_ref[...]
    # TODO(synk): training-mode dropout (fuse pltpu.prng_seed/prng_random_bits +
    # mask/scale here); inference-mode dropout is identity.
    o_ref[...] = out.astype(o_ref.dtype)


def _pad_last(a, mult):
    pad = (-a.shape[-1]) % mult
    if pad == 0:
        return a
    cfg = [(0, 0)] * (a.ndim - 1) + [(0, pad)]
    return jnp.pad(a, cfg)


def seq_embedding_forward(entity_type, entity_params, entity_embed_w,
                          param_fc_w, param_fc_b, pos_embed_w,
                          *, dropout_p=0.1, training=False, tile_s_max=1024):
    """SeqEmbedding.forward as a single fused Pallas TPU kernel.

    entity_type:    (B, S)       int
    entity_params:  (B, S, P)    float
    entity_embed_w: (NT, D)      float
    param_fc_w:     (D, P)       float  (PyTorch nn.Linear weight layout)
    param_fc_b:     (D,)         float
    pos_embed_w:    (max_len, D) float, max_len >= S
    returns: (B, S, D) in entity_params.dtype
    """
    B, S = entity_type.shape
    P = entity_params.shape[-1]
    NT, D = entity_embed_w.shape
    assert param_fc_w.shape == (D, P) and param_fc_b.shape == (D,)
    assert pos_embed_w.shape[0] >= S and pos_embed_w.shape[1] == D

    out_dtype = entity_params.dtype

    # Lane-dense output: pad d_model up to a multiple of 128 (zeros, sliced off).
    emb = _pad_last(entity_embed_w.astype(jnp.float32), _LANE)        # (NT, Dp)
    w_t = _pad_last(param_fc_w.astype(jnp.float32).T, _LANE)          # (P,  Dp)
    # Fold the Linear bias into the positional-embedding rows (same per-row add).
    pe = _pad_last(
        pos_embed_w[:S].astype(jnp.float32)
        + param_fc_b.astype(jnp.float32)[None, :], _LANE)             # (S,  Dp)
    Dp = emb.shape[-1]

    etype = entity_type.astype(jnp.int32).reshape(B, S, 1)
    eparams = entity_params.astype(jnp.float32)

    # S-tile sized so each (TILE_S, Dp) f32 buffer is ~<= 2 MiB; with double
    # buffering of pe/out/params this stays well inside VMEM on v5e/v6e/v7x.
    max_rows = max(8, (2 * 1024 * 1024) // (Dp * 4))
    if S <= max_rows:
        tile_s = S
    else:
        tile_s = min(tile_s_max, (max_rows // 8) * 8)
    num_s_tiles = pl.cdiv(S, tile_s)

    grid = (num_s_tiles, B)  # S-tiles outer, batch inner -> weights/pe stay resident.

    out = pl.pallas_call(
        _seq_embed_kernel,
        out_shape=jax.ShapeDtypeStruct((B, S, Dp), out_dtype),
        grid_spec=pltpu.PrefetchScalarGridSpec(
            num_scalar_prefetch=0,
            grid=grid,
            in_specs=[
                pl.BlockSpec((pl.Squeezed(), tile_s, 1), lambda s, b: (b, s, 0)),
                pl.BlockSpec((pl.Squeezed(), tile_s, P), lambda s, b: (b, s, 0)),
                pl.BlockSpec((NT, Dp), lambda s, b: (0, 0)),
                pl.BlockSpec((P, Dp), lambda s, b: (0, 0)),
                pl.BlockSpec((tile_s, Dp), lambda s, b: (s, 0)),
            ],
            out_specs=pl.BlockSpec((pl.Squeezed(), tile_s, Dp),
                                   lambda s, b: (b, s, 0)),
        ),
        compiler_params=pltpu.CompilerParams(
            dimension_semantics=("parallel", "parallel"),
            vmem_limit_bytes=48 * 1024 * 1024,
        ),
    )(etype, eparams, emb, w_t, pe)

    if Dp != D:
        out = out[..., :D]
    # Dropout is identity in eval/inference mode (see TODO in the kernel).
    del dropout_p, training
    return out


def init_params(key, d_model, max_len, num_entity_types=13, num_params=45):
    k_e, k_w, k_b, k_p = jax.random.split(key, 4)
    # nn.Embedding default: N(0, 1)
    entity_embed_w = jax.random.normal(k_e, (num_entity_types, d_model), jnp.float32)
    # nn.Linear default: U(-1/sqrt(fan_in), 1/sqrt(fan_in))
    bound = 1.0 / math.sqrt(num_params)
    param_fc_w = jax.random.uniform(k_w, (d_model, num_params), jnp.float32, -bound, bound)
    param_fc_b = jax.random.uniform(k_b, (d_model,), jnp.float32, -bound, bound)
    # kaiming_normal_(mode='fan_in') on (max_len, d_model): std = sqrt(2/d_model)
    pos_embed_w = math.sqrt(2.0 / d_model) * jax.random.normal(
        k_p, (max_len, d_model), jnp.float32)
    return entity_embed_w, param_fc_w, param_fc_b, pos_embed_w


if __name__ == "__main__":
    key = jax.random.PRNGKey(0)
    k_t, k_p, k_init = jax.random.split(key, 3)

    batch, seq_len, d_model, max_len = 2, 8, 128, 16
    num_entity_types, num_params = 13, 45

    # Include negative and out-of-range entity types to exercise both clamps.
    entity_type = jax.random.randint(k_t, (batch, seq_len),
                                     -3, num_entity_types + 3, dtype=jnp.int32)
    entity_params = jax.random.normal(k_p, (batch, seq_len, num_params), jnp.float32)

    entity_embed_w, param_fc_w, param_fc_b, pos_embed_w = init_params(
        k_init, d_model, max_len, num_entity_types, num_params)

    out = seq_embedding_forward(entity_type, entity_params, entity_embed_w,
                                param_fc_w, param_fc_b, pos_embed_w,
                                dropout_p=0.1, training=False)
    out = jax.block_until_ready(out)

    # Plain-JAX reference (inference mode: dropout = identity).
    safe_t = jnp.where(entity_type < 0, num_entity_types - 1, entity_type)
    safe_t = jnp.clip(safe_t, 0, num_entity_types - 1)
    type_emb = entity_embed_w[safe_t]
    safe_p = jnp.where(entity_params < 0, 0.0, entity_params)
    param_emb = safe_p @ param_fc_w.T + param_fc_b
    ref = type_emb + param_emb + pos_embed_w[:seq_len][None, :, :]

    assert out.shape == (batch, seq_len, d_model)
    max_err = float(jnp.max(jnp.abs(out - ref)))
    assert jnp.allclose(out, ref, atol=3e-2, rtol=1e-2), f"max abs err = {max_err}"

    print("KERNEL_OK")
</pallas_src>

<mosaic_0001>
module attributes {stable_mosaic.version = 11 : i64} {
  func.func @_seq_embed_kernel(%arg0: i32, %arg1: i32, %arg2: memref<1x8x1xi32, #tpu.memory_space<vmem>>, %arg3: memref<1x8x45xf32, #tpu.memory_space<vmem>>, %arg4: memref<13x128xf32, #tpu.memory_space<vmem>>, %arg5: memref<45x128xf32, #tpu.memory_space<vmem>>, %arg6: memref<8x128xf32, #tpu.memory_space<vmem>>, %arg7: memref<1x8x128xf32, #tpu.memory_space<vmem>>) attributes {dimension_semantics = [#tpu.dimension_semantics<parallel>, #tpu.dimension_semantics<parallel>], iteration_bounds = array<i64: 1, 2>, scalar_prefetch = 0 : i64, scratch_operands = 0 : i64, tpu.core_type = #tpu.core_type<tc>, window_params = [{transform_indices = @transform_0, window_bounds = array<i64: 1, 8, 1>}, {transform_indices = @transform_1, window_bounds = array<i64: 1, 8, 45>}, {pipeline_mode = #tpu.pipeline_mode<synchronous>, transform_indices = @transform_2, window_bounds = array<i64: 13, 128>}, {pipeline_mode = #tpu.pipeline_mode<synchronous>, transform_indices = @transform_3, window_bounds = array<i64: 45, 128>}, {transform_indices = @transform_4, window_bounds = array<i64: 8, 128>}, {transform_indices = @transform_5, window_bounds = array<i64: 1, 8, 128>}]} {
    %c0 = arith.constant 0 : index
    %c0_0 = arith.constant 0 : index
    %c0_1 = arith.constant 0 : index
    %0 = vector.load %arg2[%c0, %c0_0, %c0_1] : memref<1x8x1xi32, #tpu.memory_space<vmem>>, vector<1x8x1xi32>
    %1 = vector.shape_cast %0 : vector<1x8x1xi32> to vector<8x1xi32>
    %c0_i32 = arith.constant 0 : i32
    %2 = vector.broadcast %c0_i32 : i32 to vector<8x1xi32>
    %3 = arith.cmpi slt, %1, %2 : vector<8x1xi32>
    %c12_i32 = arith.constant 12 : i32
    %4 = vector.broadcast %c12_i32 : i32 to vector<8x1xi32>
    %5 = arith.select %3, %4, %1 : vector<8x1xi1>, vector<8x1xi32>
    %c0_i32_2 = arith.constant 0 : i32
    %c12_i32_3 = arith.constant 12 : i32
    %6 = vector.broadcast %c0_i32_2 : i32 to vector<8x1xi32>
    %7 = arith.maxsi %6, %5 : vector<8x1xi32>
    %8 = vector.broadcast %c12_i32_3 : i32 to vector<8x1xi32>
    %9 = arith.minsi %8, %7 : vector<8x1xi32>
    %10 = tpu.iota {dimensions = array<i32: 1>} : vector<8x13xi32>
    %11 = vector.broadcast %9 : vector<8x1xi32> to vector<8x13xi32>
    %12 = arith.cmpi eq, %10, %11 : vector<8x13xi32>
    %13 = arith.extui %12 : vector<8x13xi1> to vector<8x13xi32>
    %14 = arith.sitofp %13 : vector<8x13xi32> to vector<8x13xf32>
    %c0_4 = arith.constant 0 : index
    %c0_5 = arith.constant 0 : index
    %15 = vector.load %arg4[%c0_4, %c0_5] : memref<13x128xf32, #tpu.memory_space<vmem>>, vector<13x128xf32>
    %cst = arith.constant dense<0.000000e+00> : vector<8x128xf32>
    %16 = tpu.matmul %14, %15, %cst {dimension_numbers = #tpu.dot_dimension_numbers<[1], [0], [0], [1], [0, 0, 1, 1], [], []>} : vector<8x13xf32>, vector<13x128xf32>, vector<8x128xf32> -> vector<8x128xf32>
    %c0_6 = arith.constant 0 : index
    %c0_7 = arith.constant 0 : index
    %c0_8 = arith.constant 0 : index
    %17 = vector.load %arg3[%c0_6, %c0_7, %c0_8] : memref<1x8x45xf32, #tpu.memory_space<vmem>>, vector<1x8x45xf32>
    %18 = vector.shape_cast %17 : vector<1x8x45xf32> to vector<8x45xf32>
    %cst_9 = arith.constant 0.000000e+00 : f32
    %19 = vector.broadcast %cst_9 : f32 to vector<8x45xf32>
    %20 = arith.maximumf %18, %19 : vector<8x45xf32>
    %c0_10 = arith.constant 0 : index
    %c0_11 = arith.constant 0 : index
    %21 = vector.load %arg5[%c0_10, %c0_11] : memref<45x128xf32, #tpu.memory_space<vmem>>, vector<45x128xf32>
    %cst_12 = arith.constant dense<0.000000e+00> : vector<8x128xf32>
    %22 = tpu.matmul %20, %21, %cst_12 {dimension_numbers = #tpu.dot_dimension_numbers<[1], [0], [0], [1], [0, 0, 1, 1], [], []>} : vector<8x45xf32>, vector<45x128xf32>, vector<8x128xf32> -> vector<8x128xf32>
    %23 = arith.addf %16, %22 : vector<8x128xf32>
    %c0_13 = arith.constant 0 : index
    %c0_14 = arith.constant 0 : index
    %24 = vector.load %arg6[%c0_13, %c0_14] : memref<8x128xf32, #tpu.memory_space<vmem>>, vector<8x128xf32>
    %25 = arith.addf %23, %24 : vector<8x128xf32>
    %c0_15 = arith.constant 0 : index
    %c0_16 = arith.constant 0 : index
    %c0_17 = arith.constant 0 : index
    %26 = vector.load %arg7[%c0_15, %c0_16, %c0_17] : memref<1x8x128xf32, #tpu.memory_space<vmem>>, vector<1x8x128xf32>
    %27 = vector.shape_cast %26 : vector<1x8x128xf32> to vector<8x128xf32>
    %28 = vector.shape_cast %25 : vector<8x128xf32> to vector<1x8x128xf32>
    tpu.vector_store %arg7[%c0_15, %c0_16, %c0_17], %28 {strides = array<i32>} : memref<1x8x128xf32, #tpu.memory_space<vmem>>, vector<1x8x128xf32>,
    return
  }
  func.func @transform_0(%arg0: i32, %arg1: i32) -> (i32, i32, i32) {
    %c0_i32 = arith.constant 0 : i32
    %c0_i32_0 = arith.constant 0 : i32
    return %arg1, %arg0, %c0_i32 : i32, i32, i32
  }
  func.func @transform_1(%arg0: i32, %arg1: i32) -> (i32, i32, i32) {
    %c0_i32 = arith.constant 0 : i32
    %c0_i32_0 = arith.constant 0 : i32
    return %arg1, %arg0, %c0_i32 : i32, i32, i32
  }
  func.func @transform_2(%arg0: i32, %arg1: i32) -> (i32, i32) {
    %c0_i32 = arith.constant 0 : i32
    %c0_i32_0 = arith.constant 0 : i32
    %c0_i32_1 = arith.constant 0 : i32
    return %c0_i32, %c0_i32_0 : i32, i32
  }
  func.func @transform_3(%arg0: i32, %arg1: i32) -> (i32, i32) {
    %c0_i32 = arith.constant 0 : i32
    %c0_i32_0 = arith.constant 0 : i32
    %c0_i32_1 = arith.constant 0 : i32
    return %c0_i32, %c0_i32_0 : i32, i32
  }
  func.func @transform_4(%arg0: i32, %arg1: i32) -> (i32, i32) {
    %c0_i32 = arith.constant 0 : i32
    %c0_i32_0 = arith.constant 0 : i32
    return %arg0, %c0_i32 : i32, i32
  }
  func.func @transform_5(%arg0: i32, %arg1: i32) -> (i32, i32, i32) {
    %c0_i32 = arith.constant 0 : i32
    %c0_i32_0 = arith.constant 0 : i32
    return %arg1, %arg0, %c0_i32 : i32, i32, i32
  }
}

</mosaic_0001>

<bundles_post_ra>
// kernel: tpu_custom_call.1
= control target key start
LH: loop header
LB: loop body
LE: loop exit
PB: predicated region body
PF: predicated region fallthrough
CT: control target
= control target key end

     0   :  { %10 = vsyncpa [#allocation3], 0  ;;  %s1178_s0 = inlined_call_operand.vmem [shape: s32[2,8,1], index: 0, kind: input, shape index: {}]   ;;  %s1179_s1 = inlined_call_operand.vmem [shape: f32[2,8,45], index: 1, kind: input, shape index: {}]   ;;  %s1180_s2 = inlined_call_operand.hbm [shape: f32[13,128], index: 2, kind: input, shape index: {}]   ;;  %s1181_s3 = inlined_call_operand.hbm [shape: f32[45,128], index: 3, kind: input, shape index: {}]   ;;  %s1182_s4 = inlined_call_operand.vmem [shape: f32[8,128], index: 4, kind: input, shape index: {}]   ;;  %s1183_s5 = inlined_call_operand.hbm [shape: f32[2,8,128], index: 5, kind: output, shape index: {}]  }
   0x1   :  { %11 = vsyncpa [#allocation6], 0 }
   0x2   :  { %12 = vsyncpa [#allocation4], 0 }
   0x3   :  { %14 = vsyncpa [#allocation4 + $0x1], 0  ;;  %s977_s18 = smov 0   ;;  %s979_s19 = smov 0  }
   0x4   :  { %s981_s20 = smov 0   ;;  %s983_s21 = smov 0  }
   0x5   :  { %s985_s22 = smov 0   ;;  %s987_s23 = smov 0  }
   0x6 LB: > { %s641_s24 = sadd.s32 4294967295, %s935_s23   ;;  %s642_s25 = sadd.s32 4294967294, %s935_s23   ;;  %s935_s23 = sphi %s987_s23, %s20_s23   ;;  %s931_s22 = sphi %s985_s22, %s1206_s22   ;;  %s927_s21 = sphi %s983_s21, %s1205_s21   ;;  %s923_s20 = sphi %s981_s20, %s1204_s20   ;;  %s919_s19 = sphi %s979_s19, %s1203_s19   ;;  %s915_s18 = sphi %s977_s18, %s1202_s18  }
   0x7   : > { %s29_s26 = sadd.s32 1, %s931_s22  ;;  %s165_s27 = sadd.s32 1, %s923_s20 }
   0x8   : > { %p30_p0 = scmp.ge.s32.totalorder %s29_s26, 2  ;;  %p175_p1 = scmp.ne.s32.totalorder %s923_s20, %s919_s19 }
   0x9   : > { %p176_p2 = scmp.eq.s32.totalorder %s641_s24, 1  ;;  %p181_p3 = scmp.ne.s32.totalorder %s919_s19, %s915_s18 }
   0xa   : > { %s1208_s26 = smov (%p30_p0, %s29_s26), 0  ;;  %p182_p5 = scmp.eq.s32.totalorder %s642_s25, 1 }
   0xb   : > { %1189 = sst [smem:[#allocation11_spill]] %s1208_s26  ;;  %p1017_p4 = por %p176_p2, %p175_p1 }
   0xc   : > { %s160_s29 = ssub.s32 %s931_s22, %s1208_s26  ;;  %p643_p6 = scmp.ge.s32.totalorder %s935_s23, 1 }
   0xd   : > { %s1190_s28 = scalar_select %p1017_p4, 1, 0 }
   0xe   : > { %p163_p7 = scmp.eq.s32.totalorder %s160_s29, 0  ;;  %p1024_p8 = por %p182_p5, %p181_p3 }
   0xf   : > { %p189_p9 = scmp.lt.s32.totalorder %s935_s23, 3  ;;  %p1036_p11 = scmp.eq.s32.totalorder %s641_s24, 0 }
  0x10   : > { %s1191_s30 = scalar_select %p1024_p8, 1, 0 }
  0x11   : > { %s1030_s6 = scalar_select %p163_p7, %s923_s20, %s165_s27  }
  0x12   : > { %p1032_p10 = pnand %p643_p6, %p189_p9  ;;  %s937_s9 = smov [#allocation2]  }
  0x13   : > { %s1193_s8 = scalar_select %p1036_p11, 1, 0 }
  0x14   : > { %s1192_s7 = scalar_select %p1032_p10, 1, 0 }
  0x15   : > { %p719_p12 = pneg %p1032_p10  ;;  %s201_s10 = sshll.u32 %s937_s9, 4  ;;  %s202_s10 = int_to_ptr.vmem [resolvable:$true] %s201_s10 }
  0x16   : > { %s938_s12 = smov [#allocation5]   ;;  %s793_s16 = scalar_lea.hbm %s1180_s2, 256 }
  0x17   : > { %p1044_p13 = pnand %p1036_p11, %p719_p12  ;;  %s214_s13 = sshll.u32 %s938_s12, 4  ;;  %s1048_s13 = int_to_ptr.vmem [resolvable:$true] %s214_s13 }
  0x18   : > { %p794_p0 = scmp.ne.s32.totalorder %s1180_s2, %s793_s16  ;;  %p800_p5 = scmp.lt.u32.totalorder %s793_s16, %s1180_s2 }
  0x19   : > { %p795_p1 = pneg %p1044_p13 }
  0x1b   : > { %p796_p2 = pnand %p795_p1, %p794_p0 }
  0x1d   : > { %p797_p3 = pneg %p796_p2 }
  0x1f   : > { %p802_p6 = pnand %p800_p5, %p797_p3 }
  0x21   : > { %805 = shalt.err (!%p802_p6)
}
  0x22   : > { %s806_s29 = scalar_lea.vmem %s202_s10, 256  ;;  %p814_p8 = scmp.lt.s32.totalorder %s202_s10, %s202_s10 }
  0x23   : > { %p807_p7 = scmp.ne.s32.totalorder %s202_s10, %s806_s29  ;;  %p815_p4 = scmp.lt.s32.totalorder %s806_s29, %s806_s29 }
  0x25   : > { %p809_p9 = pnand %p807_p7, %p795_p1  ;;  %p816_p11 = por %p815_p4, %p814_p8 }
  0x27   : > { %p810_p12 = pneg %p809_p9 }
  0x29   : > { %p817_p10 = pnand %p816_p11, %p810_p12 }
  0x2b   : > { %820 = shalt.err (!%p817_p10)
}
  0x2c   : > { %s939_s9 = smov 128   ;;  %s940_s12 = smov 8  }
  0x2d   : > { %722 = dma.hbm_to_vmem [thread:$0]  (!%p1044_p13), %s1180_s2, 256, %s202_s10, [#allocation3], %s939_s9, %s939_s9, %s940_s12  }
  0x2e   : > { %s821_s24 = scalar_lea.hbm %s1181_s3, 768 }
  0x2f   : > { %p822_p0 = scmp.ne.s32.totalorder %s1181_s3, %s821_s24  ;;  %p828_p10 = scmp.lt.u32.totalorder %s821_s24, %s1181_s3 }
  0x31   : > { %p824_p4 = pnand %p822_p0, %p795_p1 }
  0x33   : > { %p825_p8 = pneg %p824_p4 }
  0x35   : > { %p830_p11 = pnand %p828_p10, %p825_p8 }
  0x37   : > { %833 = shalt.err (!%p830_p11)
}
  0x38   : > { %s834_s10 = scalar_lea.vmem %s1048_s13, 768  ;;  %p842_p6 = scmp.lt.s32.totalorder %s1048_s13, %s1048_s13 }
  0x39   : > { %p835_p2 = scmp.ne.s32.totalorder %s1048_s13, %s834_s10  ;;  %p843_p7 = scmp.lt.s32.totalorder %s834_s10, %s834_s10 }
  0x3b   : > { %p837_p3 = pnand %p835_p2, %p795_p1  ;;  %p844_p9 = por %p843_p7, %p842_p6 }
  0x3d   : > { %p838_p5 = pneg %p837_p3 }
  0x3f   : > { %p845_p12 = pnand %p844_p9, %p838_p5 }
  0x41   : > { %848 = shalt.err (!%p845_p12)
}
  0x42   : > { %725 = dma.hbm_to_vmem [thread:$0]  (!%p1044_p13), %s1181_s3, 768, %s1048_s13, [#allocation6], %s939_s9, %s939_s9, %s940_s12  }
  0x43   : > { %p1195_p0 = scmp.ne.s32.totalorder %s1192_s7, 0 }
  0x44   : > { %p1196_p4 = scmp.ne.s32.totalorder (!%p1195_p0), %s1193_s8, 0 }
  0x45   : > { %257 = sbr.rel (%p1195_p0) target bundleno = 452 (0x1c4), region = 40 }
  0x4c   : > { %902 = dma.done.wait (%p1196_p4), [#allocation3], 256  }
  0x4d   : > { %904 = vsyncadd (%p1196_p4), [#allocation3], 4294967040 }
  0x4e   : > { %906 = dma.done.wait (%p1196_p4), [#allocation6], 768  }
  0x4f   : > { %908 = vsyncadd (%p1196_p4), [#allocation6], 4294966528  ;;  %p302_p1 = scmp.lt.s32.totalorder %s927_s21, 1  ;;  %v941_v0 = vmov 0   ;;  %v942_v1 = vmov 0.0|0.0   ;;  %v339_v3 = vld [vmem:[#allocation5] sm:$0xff]  ;;  %v327_v22 = vlaneseq }
  0x50   : > { %792 = vset.pattern.permute.xlu0 %v941_v0  ;;  %695 = vmatprep.subr.bf16.mxu0 %v942_v1  ;;  %vm349_vm0 = vcmask 1044480   ;;  %v340_v4 = vld [vmem:[#allocation5 + $0x8] sm:$0xff]  ;;  %v341_v5 = vld [vmem:[#allocation5 + $0x10] sm:$0xff]  ;;  %v342_v6 = vld [vmem:[#allocation5 + $0x18] sm:$0xff]  ;;  %vm943_vm3 = vmmov 1   ;;  %vm944_vm6 = vmmov 0  }
  0x51   : > { %s303_s7 = scalar_select %p302_p1, %s927_s21, 1  ;;  %705 = vmatprep.subr.bf16.mxu1 %v942_v1  ;;  %v696_v8 = vpack.c.bf16 %v340_v4, %v339_v3  ;;  %v335_v9 = vld [vmem:[#allocation2] sm:$0xff]  ;;  %vm1112_vm4 = vmpackc.low %vm349_vm0, %vm943_vm3  ;;  %v336_v11 = vld [vmem:[#allocation2 + $0x8] sm:$0x1f]  ;;  %v699_v13 = vpack.c.bf16 %v342_v6, %v341_v5  ;;  %v945_v18 = vmov 0.0   ;;  %vm345_vm7 = vcmask 367616  }
  0x52   : > { %v706_v14 = vpack.c.bf16 %v336_v11, %v335_v9  ;;  %v343_v15 = vld [vmem:[#allocation5 + $0x20] sm:$0xff]  ;;  %v344_v16 = vld [vmem:[#allocation5 + $0x28] sm:$0x1f]  ;;  %685 = vmatprep.mubr.msk.f32.mxu0 %vm944_vm6, %v945_v18  ;;  %692 = vmatprep.mubr.msk.f32.mxu1 %vm944_vm6, %v945_v18  ;;  %v328_v23 = vand.u32 127, %v327_v22  ;;  %vm423_vm8 = vcmask 105472   ;;  %s299_s17 = sand.u32 1, %s919_s19  }
  0x53   : > { %s652_s11 = sshll.u32 %s303_s7, 3  ;;  %697 = vmatpush3.bf16.msra.mxu0 %v696_v8  ;;  %v702_v20 = vpack.c.bf16 %v344_v16, %v343_v15  ;;  %s651_s24 = sshll.u32 %s299_s17, 3  ;;  %v500_v29 = vld [vmem:[%s1182_s4] sm:$0xff] }
  0x54   : > { %s308_s12 = scalar_lea.vmem %s1178_s0, %s652_s11  ;;  %s315_s16 = scalar_lea.vmem %s1179_s1, %s652_s11  ;;  %698 = vmatprep.subr.bf16.mxu0 %v942_v1  ;;  %708 = vmatpush3.bf16.msk.msra.mxu1 %vm1112_vm4, %v706_v14 }
  0x55   : > { %v320_v2 = vld [vmem:[%s308_s12] sm:$0xff]  ;;  %s660_s29 = sshll.u32 %s927_s21, 7  ;;  %s301_s10 = scalar_lea.vmem [#allocation7], %s651_s24 }
  0x56   : > { %vm321_vm1 = vcmp.lt.s32.totalorder %v320_v2, 0  ;;  %v337_v19 = vld [vmem:[%s315_s16] sm:$0xff]  ;;  %s518_s26 = sshll.u32 %s301_s10, 4  ;;  %s1131_s11 = scalar_lea.hbm %s1183_s5, %s660_s29  ;;  %s1133_s26 = int_to_ptr.vmem [resolvable:$true] %s518_s26 }
  0x57   : > { %v322_v7 = vsel %vm321_vm1, 12, %v320_v2  ;;  %700 = vmatpush3.bf16.msra.mxu0 %v699_v13  ;;  %v338_v21 = vmax.f32 %v337_v19, 0.0  ;;  %s504_s13 = scalar_lea.sflag [#allocation4], %s299_s17  ;;  %s849_s9 = scalar_lea.vmem %s1133_s26, 128 }
  0x58   : > { %vm323_vm2 = vcmp.gt.s32.totalorder %v322_v7, 0  ;;  %701 = vmatprep.subr.bf16.mxu0 %v942_v1  ;;  %p850_p13 = scmp.ne.s32.totalorder %s1133_s26, %s849_s9  ;;  %p1199_p8 = scmp.ne.s32.totalorder %s1190_s28, 0 }
  0x59   : > { %v324_v12 = vsel %vm323_vm2, %v322_v7, 0  ;;  %s946_s21 = smov [#allocation7]  }
  0x5a   : > { %vm325_vm5 = vcmp.lt.s32.totalorder %v324_v12, 12  ;;  %p851_p10 = pnand %p850_p13, %p1199_p8  ;;  %s853_s12 = sshll.u32 %s946_s21, 4  ;;  %s854_s12 = int_to_ptr.vmem [resolvable:$false] %s853_s12 }
  0x5b   : > { %v326_v17 = vsel %vm325_vm5, %v324_v12, 12  ;;  %704 = vmatpush3.bf16.msk.msra.mxu0 %vm1112_vm4, %v702_v20  ;;  %s855_s8 = scalar_lea.vmem %s854_s12, 256  ;;  %p856_p2 = scmp.lt.s32.totalorder %s1133_s26, %s854_s12 }
  0x5c   : > { %330 = vperm.xlu0 %792, %v326_v17   ;;  %p852_p11 = pneg %p851_p10  ;;  %p857_p3 = scmp.lt.s32.totalorder %s855_s8, %s849_s9 }
  0x5e   : > { %686 = vmatmul.mubr.msk.f32.vlgmr.msra.gmra.mrb[0].mxu0 %vm345_vm7, %v338_v21  ;;  %p858_p5 = por %p857_p3, %p856_p2 }
  0x60   : > { %p859_p6 = pnand %p858_p5, %p852_p11 }
  0xdb   : > { %v331_v24 = vpop.permute.xlu0 %330 }
  0xdc   : > { %vm332_vm9 = vcmp.eq.s32.totalorder %v328_v23, %v331_v24 }
  0xdd   : > { %v654_v25 = vsel %vm332_vm9, 1.0, %v945_v18 }
  0xde   : > { %693 = vmatmul.mubr.msk.f32.vlgmr.msra.gmra.mrb[0].mxu1 %vm423_vm8, %v654_v25 }
 0x131   : > { %v419_v26 = vpop.f32.mrb[0].mxu0 }
 0x132   : > { %v687_v27 = vpop.f32.mrb[1].mxu0 }
 0x1b1   : > { %v496_v28 = vpop.f32.mrb[0].mxu1 }
 0x1b2   : > { %v497_v30 = vadd.f32 %v496_v28, %v419_v26  ;;  %v694_v31 = vpop.f32.mrb[1].mxu1 }
 0x1b4   : > { %v501_v32 = vadd.f32 %v500_v29, %v497_v30 }
 0x1b6   : > { %502 = vst [vmem:[%s301_s10] sm:$0xff] %v501_v32 }
 0x1b7   : > { %862 = shalt.err (!%p859_p6)
}
 0x1b8   : > { %s863_s15 = scalar_lea.hbm %s1131_s11, 128  ;;  %s867_s24 = scalar_lea.hbm %s1183_s5, 256 }
 0x1b9   : > { %p864_p7 = scmp.ne.s32.totalorder %s1131_s11, %s863_s15  ;;  %p868_p0 = scmp.lt.u32.totalorder %s1131_s11, %s1183_s5 }
 0x1ba   : > { %p869_p4 = scmp.lt.u32.totalorder %s867_s24, %s863_s15  ;;  %p871_p13 = scmp.lt.u32.totalorder %s863_s15, %s1131_s11 }
 0x1bb   : > { %p865_p9 = pnand %p864_p7, %p1199_p8 }
 0x1bc   : > { %p870_p1 = por %p869_p4, %p868_p0 }
 0x1bd   : > { %p866_p12 = pneg %p865_p9 }
 0x1be   : > { %p872_p10 = por %p871_p13, %p870_p1 }
 0x1c0   : > { %p873_p11 = pnand %p872_p10, %p866_p12 }
 0x1c2   : > { %876 = shalt.err (!%p873_p11)
}
 0x1c3   : > { %717 = dma.vmem_to_hbm [thread:$0]  (%p1199_p8), %s1133_s26, 128, %s1131_s11, %s504_s13  }
 0x1c4 PF: > { %p734_p2 = scmp.ge.s32.totalorder %s935_s23, 2  ;;  %s530_s29 = sand.u32 1, %s915_s18  }
 0x1c5   : > { %p1200_p3 = scmp.ne.s32.totalorder %s1191_s30, 0  ;;  %s531_s10 = scalar_lea.sflag [#allocation4], %s530_s29 }
 0x1c7   : > { %p727_p5 = pnand %p734_p2, %p1200_p3 }
 0x1c9   : > { %910 = dma.done.wait (!%p727_p5), %s531_s10, 128  }
 0x1ca   : > { %912 = vsyncadd (!%p727_p5), %s531_s10, 4294967168  ;;  %s20_s23 = sadd.s32 1, %s935_s23   ;;  %s1201_s28 = sld [smem:[#allocation11_spill]] }
 0x1cb   : > { %p17_p6 = scmp.ge.s32.totalorder %s20_s23, 4   ;;  %s1202_s18 = smov %s919_s19 }
 0x1cc   : > { %s1203_s19 = smov %s923_s20  ;;  %s1204_s20 = smov %s1030_s6 }
 0x1cd   : > { %s1205_s21 = smov %s931_s22  ;;  %19 = sbr.rel (!%p17_p6) target bundleno = 6 (0x6), region = 90 }
 0x1d0   : > { %s1206_s22 = smov %s1201_s28 }
 0x1d4   :  { %536 = vsyncpa [#allocation3], 1 }
 0x1d5   :  { %538 = vsyncpa [#allocation3 + $0x1], 1 }
 0x1d6   :  { %539 = vsyncpa [#allocation6], 1 }
 0x1d7   :  { %540 = vsyncpa [#allocation4], 1 }
 0x1d8   :  { %542 = vsyncpa [#allocation4 + $0x1], 1 }

</bundles_post_ra>
